<compile_context>
chip_gen: v6e
topology: v6e:2x2x1
jax: 0.10.0
libtpu: 0.0.40
codegen_flags: <defaults>
</compile_context>

<pallas_src>
import functools

import jax
import jax.numpy as jnp
import numpy as np
from jax import lax
from jax.experimental import pallas as pl
from jax.experimental.pallas import tpu as pltpu


@functools.lru_cache(maxsize=None)
def _tap_masks_and_offsets(H, W, K, pad):
    """Trace-time constants: per-tap 0/1 border masks and flat lane offsets."""
    HW = H * W
    pos = np.arange(HW)
    r = pos // W
    c = pos % W
    masks = np.zeros((K * K, HW), np.float32)
    offsets = []
    for kh in range(K):
        for kw in range(K):
            dr, dc = kh - pad, kw - pad
            t = kh * K + kw
            valid = ((r + dr >= 0) & (r + dr < H) &
                     (c + dc >= 0) & (c + dc < W))
            masks[t] = valid.astype(np.float32)
            offsets.append(dr * W + dc)
    return masks, tuple(offsets)


def prepare_teblock_weight(w_oihw, kernel_size):
    """Hoisted out of the per-call path: OIHW -> (Cout, K*K*Cin), padded to x8."""
    Cout, Cin, K, _ = w_oihw.shape
    kkc = K * K * Cin
    kkc_pad = ((kkc + 7) // 8) * 8
    w2 = jnp.transpose(w_oihw, (0, 2, 3, 1)).reshape(Cout, kkc)
    if kkc_pad != kkc:
        w2 = jnp.pad(w2, ((0, 0), (0, kkc_pad - kkc)))
    return w2.astype(jnp.float32)


def _conv_stats_kernel(x_ref, w_ref, m_ref, conv_ref, sum_ref, sq_ref,
                       col_ref, *, Cin, HW, offsets):
    # x_ref:    (1, Cin, HW)     one batch element, lanes = H*W
    # w_ref:    (Cout, KKC_pad)  conv weights (padded contraction)
    # m_ref:    (K*K, HW)        0/1 border masks (precomputed constant)
    # conv_ref: (1, Cout, HW)    f32 conv output
    # sum/sq:   (1, Cout, 1)     per-batch partial BN statistics
    # col_ref:  (KKC_pad, HW)    VMEM scratch holding the im2col slab
    x = x_ref[0]                                   # (Cin, HW)
    masks = m_ref[...]                             # (K*K, HW)

    kkc = len(offsets) * Cin
    kkc_pad = col_ref.shape[0]
    # Zero the alignment-padding rows (their weight columns are zero too, but
    # uninitialized VMEM could hold NaNs and 0*NaN would poison the matmul).
    if kkc_pad > kkc:
        col_ref[pl.ds(kkc, kkc_pad - kkc), :] = jnp.zeros(
            (kkc_pad - kkc, HW), jnp.float32)

    # One shifted (XLU roll) + masked slab per conv tap; wrap lanes are always
    # inside the mask-invalid region for same padding, so roll is exact.
    for t, off in enumerate(offsets):
        sh = x if off == 0 else pltpu.roll(x, shift=(-off) % HW, axis=1)
        col_ref[pl.ds(t * Cin, Cin), :] = sh * masks[t:t + 1, :]

    # Entire conv for this batch element = one MXU matmul.
    conv = jnp.dot(w_ref[...], col_ref[...],
                   preferred_element_type=jnp.float32)   # (Cout, HW)
    conv_ref[0] = conv

    # Per-batch partial BN statistics (kept in f32).
    sum_ref[0] = jnp.sum(conv, axis=1, keepdims=True)
    sq_ref[0] = jnp.sum(conv * conv, axis=1, keepdims=True)


def _bn_lrelu_kernel(conv_ref, scale_ref, shift_ref, o_ref):
    # Folded BN (y = conv*s + t) + LeakyReLU(0.1) via max(y, 0.1*y).
    y = conv_ref[0] * scale_ref[...] + shift_ref[...]
    o_ref[0] = jnp.maximum(y, 0.1 * y).astype(o_ref.dtype)


@functools.partial(jax.jit, static_argnames=("kernel_size",))
def teblock_forward(x_nchw, w2, gamma, beta, *, kernel_size):
    N, Cin, H, W = x_nchw.shape
    Cout, kkc_pad = w2.shape
    K = kernel_size
    pad = (K - 1) // 2
    HW = H * W
    KK = K * K

    masks_np, offsets = _tap_masks_and_offsets(H, W, K, pad)
    masks = jnp.asarray(masks_np)                  # (K*K, HW) tiny constant

    x3 = x_nchw.reshape(N, Cin, HW)                # free, layout-preserving

    conv_kernel = functools.partial(_conv_stats_kernel, Cin=Cin, HW=HW,
                                    offsets=offsets)

    conv, psum, psq = pl.pallas_call(
        conv_kernel,
        out_shape=(jax.ShapeDtypeStruct((N, Cout, HW), jnp.float32),
                   jax.ShapeDtypeStruct((N, Cout, 1), jnp.float32),
                   jax.ShapeDtypeStruct((N, Cout, 1), jnp.float32)),
        grid_spec=pltpu.PrefetchScalarGridSpec(
            num_scalar_prefetch=0,
            grid=(N,),
            in_specs=[
                pl.BlockSpec((1, Cin, HW), lambda n: (n, 0, 0)),
                pl.BlockSpec((Cout, kkc_pad), lambda n: (0, 0)),
                pl.BlockSpec((KK, HW), lambda n: (0, 0)),
            ],
            out_specs=[
                pl.BlockSpec((1, Cout, HW), lambda n: (n, 0, 0)),
                pl.BlockSpec((1, Cout, 1), lambda n: (n, 0, 0)),
                pl.BlockSpec((1, Cout, 1), lambda n: (n, 0, 0)),
            ],
            scratch_shapes=[pltpu.VMEM((kkc_pad, HW), jnp.float32)],
        ),
        compiler_params=pltpu.CompilerParams(
            dimension_semantics=("parallel",)),
        cost_estimate=pl.CostEstimate(
            flops=2 * N * Cout * KK * Cin * HW + 4 * N * Cout * HW,
            transcendentals=0,
            bytes_accessed=4 * (N * Cin * HW + Cout * kkc_pad + KK * HW
                                + N * Cout * (HW + 2))),
    )(x3, w2, masks)

    # BatchNorm2d training-mode statistics over the full (N, H, W) extent,
    # folded into a single per-channel scale/shift (tiny XLA reduce over N).
    cnt = jnp.float32(N * HW)
    mean = jnp.sum(psum, axis=0) / cnt                        # (Cout, 1)
    var = jnp.maximum(jnp.sum(psq, axis=0) / cnt - mean * mean, 0.0)  # biased
    scale = gamma.reshape(Cout, 1).astype(jnp.float32) * lax.rsqrt(var + 1e-5)
    shift = beta.reshape(Cout, 1).astype(jnp.float32) - mean * scale

    out = pl.pallas_call(
        _bn_lrelu_kernel,
        out_shape=jax.ShapeDtypeStruct((N, Cout, HW), x_nchw.dtype),
        grid_spec=pltpu.PrefetchScalarGridSpec(
            num_scalar_prefetch=0,
            grid=(N,),
            in_specs=[
                pl.BlockSpec((1, Cout, HW), lambda n: (n, 0, 0)),
                pl.BlockSpec((Cout, 1), lambda n: (0, 0)),
                pl.BlockSpec((Cout, 1), lambda n: (0, 0)),
            ],
            out_specs=pl.BlockSpec((1, Cout, HW), lambda n: (n, 0, 0)),
        ),
        compiler_params=pltpu.CompilerParams(
            dimension_semantics=("parallel",)),
        cost_estimate=pl.CostEstimate(
            flops=3 * N * Cout * HW, transcendentals=0,
            bytes_accessed=4 * (2 * N * Cout * HW + 2 * Cout)),
    )(conv, scale, shift)

    # Free reshape back to NCHW.
    return out.reshape(N, Cout, H, W)


def teblock_reference(x_nchw, w_oihw, gamma, beta, kernel_size):
    pad = (kernel_size - 1) // 2
    conv = jax.lax.conv_general_dilated(
        x_nchw, w_oihw, window_strides=(1, 1),
        padding=((pad, pad), (pad, pad)),
        dimension_numbers=('NCHW', 'OIHW', 'NCHW'))
    mean = conv.mean(axis=(0, 2, 3), keepdims=True)
    var = ((conv - mean) ** 2).mean(axis=(0, 2, 3), keepdims=True)  # biased
    y = (conv - mean) / jnp.sqrt(var + 1e-5)
    y = y * gamma.reshape(1, -1, 1, 1) + beta.reshape(1, -1, 1, 1)
    return jnp.where(y >= 0, y, 0.1 * y)


if __name__ == "__main__":
    in_planes, out_planes, kernel_size = 4, 8, 3
    N, H, W = 2, 16, 16

    key = jax.random.PRNGKey(0)
    kx, kw, kg, kb = jax.random.split(key, 4)

    x = jax.random.normal(kx, (N, in_planes, H, W), jnp.float32)
    # Conv2d weight, PyTorch layout (out, in, k, k); deterministic synthetic init.
    fan_in = in_planes * kernel_size * kernel_size
    w = jax.random.normal(kw, (out_planes, in_planes, kernel_size, kernel_size),
                          jnp.float32) / np.sqrt(fan_in)
    # BatchNorm affine params (nontrivial but deterministic).
    gamma = 1.0 + 0.1 * jax.random.normal(kg, (out_planes,), jnp.float32)
    beta = 0.1 * jax.random.normal(kb, (out_planes,), jnp.float32)

    # Weight repack hoisted out of the per-call path.
    w2 = prepare_teblock_weight(w, kernel_size)

    out = teblock_forward(x, w2, gamma, beta, kernel_size=kernel_size)
    out = jax.block_until_ready(out)

    ref = teblock_reference(x, w, gamma, beta, kernel_size)
    np.testing.assert_allclose(np.asarray(out), np.asarray(ref),
                               rtol=1e-4, atol=1e-4)

    print("KERNEL_OK")
</pallas_src>

<mosaic_0001>
module attributes {stable_mosaic.version = 11 : i64} {
  func.func @_conv_stats_kernel(%arg0: i32, %arg1: memref<1x4x256xf32, #tpu.memory_space<vmem>>, %arg2: memref<8x40xf32, #tpu.memory_space<vmem>>, %arg3: memref<9x256xf32, #tpu.memory_space<vmem>>, %arg4: memref<1x8x256xf32, #tpu.memory_space<vmem>>, %arg5: memref<1x8x1xf32, #tpu.memory_space<vmem>>, %arg6: memref<1x8x1xf32, #tpu.memory_space<vmem>>, %arg7: memref<40x256xf32, #tpu.memory_space<vmem>>) attributes {dimension_semantics = [#tpu.dimension_semantics<parallel>], iteration_bounds = array<i64: 2>, scalar_prefetch = 0 : i64, scratch_operands = 1 : i64, tpu.core_type = #tpu.core_type<tc>, window_params = [{transform_indices = @transform_0, window_bounds = array<i64: 1, 4, 256>}, {pipeline_mode = #tpu.pipeline_mode<synchronous>, transform_indices = @transform_1, window_bounds = array<i64: 8, 40>}, {pipeline_mode = #tpu.pipeline_mode<synchronous>, transform_indices = @transform_2, window_bounds = array<i64: 9, 256>}, {transform_indices = @transform_3, window_bounds = array<i64: 1, 8, 256>}, {transform_indices = @transform_4, window_bounds = array<i64: 1, 8, 1>}, {transform_indices = @transform_5, window_bounds = array<i64: 1, 8, 1>}]} {
    %c0 = arith.constant 0 : index
    %c0_0 = arith.constant 0 : index
    %c0_1 = arith.constant 0 : index
    %0 = vector.load %arg1[%c0, %c0_0, %c0_1] : memref<1x4x256xf32, #tpu.memory_space<vmem>>, vector<1x4x256xf32>
    %1 = vector.shape_cast %0 : vector<1x4x256xf32> to vector<4x256xf32>
    %c0_2 = arith.constant 0 : index
    %c0_3 = arith.constant 0 : index
    %2 = vector.load %arg3[%c0_2, %c0_3] : memref<9x256xf32, #tpu.memory_space<vmem>>, vector<9x256xf32>
    %cst = arith.constant 0.000000e+00 : f32
    %3 = vector.broadcast %cst : f32 to vector<4x256xf32>
    %c36 = arith.constant 36 : index
    %c0_4 = arith.constant 0 : index
    %4 = vector.load %arg7[%c36, %c0_4] : memref<40x256xf32, #tpu.memory_space<vmem>>, vector<4x256xf32>
    tpu.vector_store %arg7[%c36, %c0_4], %3 {strides = array<i32>} : memref<40x256xf32, #tpu.memory_space<vmem>>, vector<4x256xf32>,
    %c17_i32 = arith.constant 17 : i32
    %5 = tpu.dynamic_rotate %1 by %c17_i32 dim 1 : vector<4x256xf32>, i32 -> vector<4x256xf32>
    %6 = vector.extract_strided_slice %2 {offsets = [0, 0], sizes = [1, 256], strides = [1, 1]} : vector<9x256xf32> to vector<1x256xf32>
    %7 = vector.broadcast %6 : vector<1x256xf32> to vector<4x256xf32>
    %8 = arith.mulf %5, %7 : vector<4x256xf32>
    %c0_5 = arith.constant 0 : index
    %c0_6 = arith.constant 0 : index
    %9 = vector.load %arg7[%c0_5, %c0_6] : memref<40x256xf32, #tpu.memory_space<vmem>>, vector<4x256xf32>
    tpu.vector_store %arg7[%c0_5, %c0_6], %8 {strides = array<i32>} : memref<40x256xf32, #tpu.memory_space<vmem>>, vector<4x256xf32>,
    %c16_i32 = arith.constant 16 : i32
    %10 = tpu.dynamic_rotate %1 by %c16_i32 dim 1 : vector<4x256xf32>, i32 -> vector<4x256xf32>
    %11 = vector.extract_strided_slice %2 {offsets = [1, 0], sizes = [1, 256], strides = [1, 1]} : vector<9x256xf32> to vector<1x256xf32>
    %12 = vector.broadcast %11 : vector<1x256xf32> to vector<4x256xf32>
    %13 = arith.mulf %10, %12 : vector<4x256xf32>
    %c4 = arith.constant 4 : index
    %c0_7 = arith.constant 0 : index
    %14 = vector.load %arg7[%c4, %c0_7] : memref<40x256xf32, #tpu.memory_space<vmem>>, vector<4x256xf32>
    tpu.vector_store %arg7[%c4, %c0_7], %13 {strides = array<i32>} : memref<40x256xf32, #tpu.memory_space<vmem>>, vector<4x256xf32>,
    %c15_i32 = arith.constant 15 : i32
    %15 = tpu.dynamic_rotate %1 by %c15_i32 dim 1 : vector<4x256xf32>, i32 -> vector<4x256xf32>
    %16 = vector.extract_strided_slice %2 {offsets = [2, 0], sizes = [1, 256], strides = [1, 1]} : vector<9x256xf32> to vector<1x256xf32>
    %17 = vector.broadcast %16 : vector<1x256xf32> to vector<4x256xf32>
    %18 = arith.mulf %15, %17 : vector<4x256xf32>
    %c8 = arith.constant 8 : index
    %c0_8 = arith.constant 0 : index
    %19 = vector.load %arg7[%c8, %c0_8] : memref<40x256xf32, #tpu.memory_space<vmem>>, vector<4x256xf32>
    tpu.vector_store %arg7[%c8, %c0_8], %18 {strides = array<i32>} : memref<40x256xf32, #tpu.memory_space<vmem>>, vector<4x256xf32>,
    %c1_i32 = arith.constant 1 : i32
    %20 = tpu.dynamic_rotate %1 by %c1_i32 dim 1 : vector<4x256xf32>, i32 -> vector<4x256xf32>
    %21 = vector.extract_strided_slice %2 {offsets = [3, 0], sizes = [1, 256], strides = [1, 1]} : vector<9x256xf32> to vector<1x256xf32>
    %22 = vector.broadcast %21 : vector<1x256xf32> to vector<4x256xf32>
    %23 = arith.mulf %20, %22 : vector<4x256xf32>
    %c12 = arith.constant 12 : index
    %c0_9 = arith.constant 0 : index
    %24 = vector.load %arg7[%c12, %c0_9] : memref<40x256xf32, #tpu.memory_space<vmem>>, vector<4x256xf32>
    tpu.vector_store %arg7[%c12, %c0_9], %23 {strides = array<i32>} : memref<40x256xf32, #tpu.memory_space<vmem>>, vector<4x256xf32>,
    %25 = vector.extract_strided_slice %2 {offsets = [4, 0], sizes = [1, 256], strides = [1, 1]} : vector<9x256xf32> to vector<1x256xf32>
    %26 = vector.broadcast %25 : vector<1x256xf32> to vector<4x256xf32>
    %27 = arith.mulf %1, %26 : vector<4x256xf32>
    %c16 = arith.constant 16 : index
    %c0_10 = arith.constant 0 : index
    %28 = vector.load %arg7[%c16, %c0_10] : memref<40x256xf32, #tpu.memory_space<vmem>>, vector<4x256xf32>
    tpu.vector_store %arg7[%c16, %c0_10], %27 {strides = array<i32>} : memref<40x256xf32, #tpu.memory_space<vmem>>, vector<4x256xf32>,
    %c255_i32 = arith.constant 255 : i32
    %29 = tpu.dynamic_rotate %1 by %c255_i32 dim 1 : vector<4x256xf32>, i32 -> vector<4x256xf32>
    %30 = vector.extract_strided_slice %2 {offsets = [5, 0], sizes = [1, 256], strides = [1, 1]} : vector<9x256xf32> to vector<1x256xf32>
    %31 = vector.broadcast %30 : vector<1x256xf32> to vector<4x256xf32>
    %32 = arith.mulf %29, %31 : vector<4x256xf32>
    %c20 = arith.constant 20 : index
    %c0_11 = arith.constant 0 : index
    %33 = vector.load %arg7[%c20, %c0_11] : memref<40x256xf32, #tpu.memory_space<vmem>>, vector<4x256xf32>
    tpu.vector_store %arg7[%c20, %c0_11], %32 {strides = array<i32>} : memref<40x256xf32, #tpu.memory_space<vmem>>, vector<4x256xf32>,
    %c241_i32 = arith.constant 241 : i32
    %34 = tpu.dynamic_rotate %1 by %c241_i32 dim 1 : vector<4x256xf32>, i32 -> vector<4x256xf32>
    %35 = vector.extract_strided_slice %2 {offsets = [6, 0], sizes = [1, 256], strides = [1, 1]} : vector<9x256xf32> to vector<1x256xf32>
    %36 = vector.broadcast %35 : vector<1x256xf32> to vector<4x256xf32>
    %37 = arith.mulf %34, %36 : vector<4x256xf32>
    %c24 = arith.constant 24 : index
    %c0_12 = arith.constant 0 : index
    %38 = vector.load %arg7[%c24, %c0_12] : memref<40x256xf32, #tpu.memory_space<vmem>>, vector<4x256xf32>
    tpu.vector_store %arg7[%c24, %c0_12], %37 {strides = array<i32>} : memref<40x256xf32, #tpu.memory_space<vmem>>, vector<4x256xf32>,
    %c240_i32 = arith.constant 240 : i32
    %39 = tpu.dynamic_rotate %1 by %c240_i32 dim 1 : vector<4x256xf32>, i32 -> vector<4x256xf32>
    %40 = vector.extract_strided_slice %2 {offsets = [7, 0], sizes = [1, 256], strides = [1, 1]} : vector<9x256xf32> to vector<1x256xf32>
    %41 = vector.broadcast %40 : vector<1x256xf32> to vector<4x256xf32>
    %42 = arith.mulf %39, %41 : vector<4x256xf32>
    %c28 = arith.constant 28 : index
    %c0_13 = arith.constant 0 : index
    %43 = vector.load %arg7[%c28, %c0_13] : memref<40x256xf32, #tpu.memory_space<vmem>>, vector<4x256xf32>
    tpu.vector_store %arg7[%c28, %c0_13], %42 {strides = array<i32>} : memref<40x256xf32, #tpu.memory_space<vmem>>, vector<4x256xf32>,
    %c239_i32 = arith.constant 239 : i32
    %44 = tpu.dynamic_rotate %1 by %c239_i32 dim 1 : vector<4x256xf32>, i32 -> vector<4x256xf32>
    %45 = vector.extract_strided_slice %2 {offsets = [8, 0], sizes = [1, 256], strides = [1, 1]} : vector<9x256xf32> to vector<1x256xf32>
    %46 = vector.broadcast %45 : vector<1x256xf32> to vector<4x256xf32>
    %47 = arith.mulf %44, %46 : vector<4x256xf32>
    %c32 = arith.constant 32 : index
    %c0_14 = arith.constant 0 : index
    %48 = vector.load %arg7[%c32, %c0_14] : memref<40x256xf32, #tpu.memory_space<vmem>>, vector<4x256xf32>
    tpu.vector_store %arg7[%c32, %c0_14], %47 {strides = array<i32>} : memref<40x256xf32, #tpu.memory_space<vmem>>, vector<4x256xf32>,
    %c0_15 = arith.constant 0 : index
    %c0_16 = arith.constant 0 : index
    %49 = vector.load %arg2[%c0_15, %c0_16] : memref<8x40xf32, #tpu.memory_space<vmem>>, vector<8x40xf32>
    %c0_17 = arith.constant 0 : index
    %c0_18 = arith.constant 0 : index
    %50 = vector.load %arg7[%c0_17, %c0_18] : memref<40x256xf32, #tpu.memory_space<vmem>>, vector<40x256xf32>
    %cst_19 = arith.constant dense<0.000000e+00> : vector<8x256xf32>
    %51 = tpu.matmul %49, %50, %cst_19 {dimension_numbers = #tpu.dot_dimension_numbers<[1], [0], [0], [1], [0, 0, 1, 1], [], []>} : vector<8x40xf32>, vector<40x256xf32>, vector<8x256xf32> -> vector<8x256xf32>
    %c0_20 = arith.constant 0 : index
    %c0_21 = arith.constant 0 : index
    %c0_22 = arith.constant 0 : index
    %52 = vector.load %arg4[%c0_20, %c0_21, %c0_22] : memref<1x8x256xf32, #tpu.memory_space<vmem>>, vector<1x8x256xf32>
    %53 = vector.shape_cast %52 : vector<1x8x256xf32> to vector<8x256xf32>
    %54 = vector.shape_cast %51 : vector<8x256xf32> to vector<1x8x256xf32>
    tpu.vector_store %arg4[%c0_20, %c0_21, %c0_22], %54 {strides = array<i32>} : memref<1x8x256xf32, #tpu.memory_space<vmem>>, vector<1x8x256xf32>,
    %cst_23 = arith.constant dense<0.000000e+00> : vector<8xf32>
    %55 = vector.multi_reduction <add>, %51, %cst_23 [1] : vector<8x256xf32> to vector<8xf32>
    %56 = vector.shape_cast %55 : vector<8xf32> to vector<8x1xf32>
    %c0_24 = arith.constant 0 : index
    %c0_25 = arith.constant 0 : index
    %c0_26 = arith.constant 0 : index
    %57 = vector.load %arg5[%c0_24, %c0_25, %c0_26] : memref<1x8x1xf32, #tpu.memory_space<vmem>>, vector<1x8x1xf32>
    %58 = vector.shape_cast %57 : vector<1x8x1xf32> to vector<8x1xf32>
    %59 = vector.shape_cast %56 : vector<8x1xf32> to vector<1x8x1xf32>
    tpu.vector_store %arg5[%c0_24, %c0_25, %c0_26], %59 {strides = array<i32>} : memref<1x8x1xf32, #tpu.memory_space<vmem>>, vector<1x8x1xf32>,
    %60 = arith.mulf %51, %51 : vector<8x256xf32>
    %cst_27 = arith.constant dense<0.000000e+00> : vector<8xf32>
    %61 = vector.multi_reduction <add>, %60, %cst_27 [1] : vector<8x256xf32> to vector<8xf32>
    %62 = vector.shape_cast %61 : vector<8xf32> to vector<8x1xf32>
    %c0_28 = arith.constant 0 : index
    %c0_29 = arith.constant 0 : index
    %c0_30 = arith.constant 0 : index
    %63 = vector.load %arg6[%c0_28, %c0_29, %c0_30] : memref<1x8x1xf32, #tpu.memory_space<vmem>>, vector<1x8x1xf32>
    %64 = vector.shape_cast %63 : vector<1x8x1xf32> to vector<8x1xf32>
    %65 = vector.shape_cast %62 : vector<8x1xf32> to vector<1x8x1xf32>
    tpu.vector_store %arg6[%c0_28, %c0_29, %c0_30], %65 {strides = array<i32>} : memref<1x8x1xf32, #tpu.memory_space<vmem>>, vector<1x8x1xf32>,
    return
  }
  func.func @transform_0(%arg0: i32) -> (i32, i32, i32) {
    %c0_i32 = arith.constant 0 : i32
    %c0_i32_0 = arith.constant 0 : i32
    %c0_i32_1 = arith.constant 0 : i32
    return %arg0, %c0_i32, %c0_i32_0 : i32, i32, i32
  }
  func.func @transform_1(%arg0: i32) -> (i32, i32) {
    %c0_i32 = arith.constant 0 : i32
    %c0_i32_0 = arith.constant 0 : i32
    %c0_i32_1 = arith.constant 0 : i32
    return %c0_i32, %c0_i32_0 : i32, i32
  }
  func.func @transform_2(%arg0: i32) -> (i32, i32) {
    %c0_i32 = arith.constant 0 : i32
    %c0_i32_0 = arith.constant 0 : i32
    %c0_i32_1 = arith.constant 0 : i32
    return %c0_i32, %c0_i32_0 : i32, i32
  }
  func.func @transform_3(%arg0: i32) -> (i32, i32, i32) {
    %c0_i32 = arith.constant 0 : i32
    %c0_i32_0 = arith.constant 0 : i32
    %c0_i32_1 = arith.constant 0 : i32
    return %arg0, %c0_i32, %c0_i32_0 : i32, i32, i32
  }
  func.func @transform_4(%arg0: i32) -> (i32, i32, i32) {
    %c0_i32 = arith.constant 0 : i32
    %c0_i32_0 = arith.constant 0 : i32
    %c0_i32_1 = arith.constant 0 : i32
    return %arg0, %c0_i32, %c0_i32_0 : i32, i32, i32
  }
  func.func @transform_5(%arg0: i32) -> (i32, i32, i32) {
    %c0_i32 = arith.constant 0 : i32
    %c0_i32_0 = arith.constant 0 : i32
    %c0_i32_1 = arith.constant 0 : i32
    return %arg0, %c0_i32, %c0_i32_0 : i32, i32, i32
  }
}

module attributes {stable_mosaic.version = 11 : i64} {
  func.func @_bn_lrelu_kernel(%arg0: i32, %arg1: memref<1x8x256xf32, #tpu.memory_space<vmem>>, %arg2: memref<8x1xf32, #tpu.memory_space<vmem>>, %arg3: memref<8x1xf32, #tpu.memory_space<vmem>>, %arg4: memref<1x8x256xf32, #tpu.memory_space<vmem>>) attributes {dimension_semantics = [#tpu.dimension_semantics<parallel>], iteration_bounds = array<i64: 2>, scalar_prefetch = 0 : i64, scratch_operands = 0 : i64, tpu.core_type = #tpu.core_type<tc>, window_params = [{transform_indices = @transform_0, window_bounds = array<i64: 1, 8, 256>}, {pipeline_mode = #tpu.pipeline_mode<synchronous>, transform_indices = @transform_1, window_bounds = array<i64: 8, 1>}, {pipeline_mode = #tpu.pipeline_mode<synchronous>, transform_indices = @transform_2, window_bounds = array<i64: 8, 1>}, {transform_indices = @transform_3, window_bounds = array<i64: 1, 8, 256>}]} {
    %c0 = arith.constant 0 : index
    %c0_0 = arith.constant 0 : index
    %c0_1 = arith.constant 0 : index
    %0 = vector.load %arg1[%c0, %c0_0, %c0_1] : memref<1x8x256xf32, #tpu.memory_space<vmem>>, vector<1x8x256xf32>
    %1 = vector.shape_cast %0 : vector<1x8x256xf32> to vector<8x256xf32>
    %c0_2 = arith.constant 0 : index
    %c0_3 = arith.constant 0 : index
    %2 = vector.load %arg2[%c0_2, %c0_3] : memref<8x1xf32, #tpu.memory_space<vmem>>, vector<8x1xf32>
    %3 = vector.broadcast %2 : vector<8x1xf32> to vector<8x256xf32>
    %4 = arith.mulf %1, %3 : vector<8x256xf32>
    %c0_4 = arith.constant 0 : index
    %c0_5 = arith.constant 0 : index
    %5 = vector.load %arg3[%c0_4, %c0_5] : memref<8x1xf32, #tpu.memory_space<vmem>>, vector<8x1xf32>
    %6 = vector.broadcast %5 : vector<8x1xf32> to vector<8x256xf32>
    %7 = arith.addf %4, %6 : vector<8x256xf32>
    %cst = arith.constant 1.000000e-01 : f32
    %8 = vector.broadcast %cst : f32 to vector<8x256xf32>
    %9 = arith.mulf %8, %7 : vector<8x256xf32>
    %10 = arith.maximumf %7, %9 : vector<8x256xf32>
    %c0_6 = arith.constant 0 : index
    %c0_7 = arith.constant 0 : index
    %c0_8 = arith.constant 0 : index
    %11 = vector.load %arg4[%c0_6, %c0_7, %c0_8] : memref<1x8x256xf32, #tpu.memory_space<vmem>>, vector<1x8x256xf32>
    %12 = vector.shape_cast %11 : vector<1x8x256xf32> to vector<8x256xf32>
    %13 = vector.shape_cast %10 : vector<8x256xf32> to vector<1x8x256xf32>
    tpu.vector_store %arg4[%c0_6, %c0_7, %c0_8], %13 {strides = array<i32>} : memref<1x8x256xf32, #tpu.memory_space<vmem>>, vector<1x8x256xf32>,
    return
  }
  func.func @transform_0(%arg0: i32) -> (i32, i32, i32) {
    %c0_i32 = arith.constant 0 : i32
    %c0_i32_0 = arith.constant 0 : i32
    %c0_i32_1 = arith.constant 0 : i32
    return %arg0, %c0_i32, %c0_i32_0 : i32, i32, i32
  }
  func.func @transform_1(%arg0: i32) -> (i32, i32) {
    %c0_i32 = arith.constant 0 : i32
    %c0_i32_0 = arith.constant 0 : i32
    %c0_i32_1 = arith.constant 0 : i32
    return %c0_i32, %c0_i32_0 : i32, i32
  }
  func.func @transform_2(%arg0: i32) -> (i32, i32) {
    %c0_i32 = arith.constant 0 : i32
    %c0_i32_0 = arith.constant 0 : i32
    %c0_i32_1 = arith.constant 0 : i32
    return %c0_i32, %c0_i32_0 : i32, i32
  }
  func.func @transform_3(%arg0: i32) -> (i32, i32, i32) {
    %c0_i32 = arith.constant 0 : i32
    %c0_i32_0 = arith.constant 0 : i32
    %c0_i32_1 = arith.constant 0 : i32
    return %arg0, %c0_i32, %c0_i32_0 : i32, i32, i32
  }
}

</mosaic_0001>

<bundles_post_ra>
// kernel: teblock_forward.3
= control target key start
LH: loop header
LB: loop body
LE: loop exit
PB: predicated region body
PF: predicated region fallthrough
CT: control target
= control target key end

     0   :  { %s302_s12 = smov 0   ;;  %s325_s0 = inlined_call_operand.vmem [shape: f32[2,8,256], index: 0, kind: input, shape index: {}]   ;;  %s326_s1 = inlined_call_operand.vmem [shape: f32[8,1], index: 1, kind: input, shape index: {}]   ;;  %s327_s2 = inlined_call_operand.vmem [shape: f32[8,1], index: 2, kind: input, shape index: {}]   ;;  %s328_s3 = inlined_call_operand.vmem [shape: f32[2,8,256], index: 3, kind: output, shape index: {}]  }
   0x1 LB: > { %s250_s13 = sadd.s32 4294967295, %s279_s12   ;;  %p254_p0 = scmp.ge.s32.totalorder %s279_s12, 1  ;;  %s279_s12 = sphi %s302_s12, %s13_s12  }
   0x2   : > { %p137_p1 = scmp.lt.s32.totalorder %s279_s12, 3 }
   0x4   : > { %p138_p2 = pnand %p254_p0, %p137_p1 }
   0x5   : > { %p161_p3 = scmp.lt.s32.totalorder (!%p138_p2), %s250_s13, 1 }
   0x6   : > { %141 = sbr.rel (%p138_p2) target bundleno = 148 (0x94), region = 32 }
   0xb   : > { %v173_v0 = vld [vmem:[%s326_s1] sm:$0xff]  ;;  %v281_v1 = vmov 0   ;;  %s330_s13 = smov (!%p161_p3, %s250_s13), 1 }
   0xc   : > { %272 = vset.pattern.permute.xlu0 %v281_v1  ;;  %v181_v2 = vld [vmem:[%s327_s2] sm:$0xff]  ;;  %s261_s18 = sshll.u32 %s330_s13, 4 }
   0xd   : > { %176 = vperm.xlu0 %272, %v173_v0   ;;  %s165_s21 = scalar_lea.vmem %s325_s0, %s261_s18  ;;  %s170_s24 = scalar_lea.vmem %s328_s3, %s261_s18 }
   0xe   : > { %v171_v4 = vld [vmem:[%s165_s21] sm:$0xff]  ;;  %v172_v5 = vld [vmem:[%s165_s21 + $0x8] sm:$0xff] }
  0x11   : > { %184 = vperm.xlu0 %272, %v181_v2  }
  0x88   : > { %v177_v3 = vpop.permute.xlu0 %176 }
  0x89   : > { %v179_v6 = vmul.f32 %v177_v3, %v171_v4  ;;  %v180_v7 = vmul.f32 %v177_v3, %v172_v5 }
  0x8c   : > { %v185_v8 = vpop.permute.xlu0 %184 }
  0x8d   : > { %v187_v9 = vadd.f32 %v185_v8, %v179_v6  ;;  %v188_v10 = vadd.f32 %v185_v8, %v180_v7 }
  0x8f   : > { %v189_v11 = vmul.f32 0.1, %v187_v9  ;;  %v190_v12 = vmul.f32 0.1, %v188_v10 }
  0x91   : > { %v191_v13 = vmax.f32 %v187_v9, %v189_v11  ;;  %v192_v14 = vmax.f32 %v188_v10, %v190_v12 }
  0x93   : > { %193 = vst [vmem:[%s170_s24] sm:$0xff] %v191_v13  ;;  %194 = vst [vmem:[%s170_s24 + $0x8] sm:$0xff] %v192_v14 }
  0x94 PF: > { %s13_s12 = sadd.s32 1, %s279_s12  }
  0x95   : > { %p10_p4 = scmp.ge.s32.totalorder %s13_s12, 4  }
  0x97   :  { %12 = sbr.rel (!%p10_p4) target bundleno = 1 (0x1), region = 62 }

// kernel: teblock_forward.2
= control target key start
LH: loop header
LB: loop body
LE: loop exit
PB: predicated region body
PF: predicated region fallthrough
CT: control target
= control target key end

     0   :  { %s751_s18 = smov 0   ;;  %s856_s0 = inlined_call_operand.vmem [shape: f32[2,4,256], index: 0, kind: input, shape index: {}]   ;;  %s857_s1 = inlined_call_operand.vmem [shape: f32[8,40], index: 1, kind: input, shape index: {}]   ;;  %s858_s2 = inlined_call_operand.vmem [shape: f32[9,256], index: 2, kind: input, shape index: {}]   ;;  %s859_s3 = inlined_call_operand.vmem [shape: f32[2,8,256], index: 3, kind: output, shape index: {0}]   ;;  %s860_s4 = inlined_call_operand.vmem [shape: f32[2,8,1], index: 4, kind: output, shape index: {1}]   ;;  %s861_s5 = inlined_call_operand.vmem [shape: f32[2,8,1], index: 5, kind: output, shape index: {2}]  }
   0x1 LB: > { %s668_s19 = sadd.s32 4294967295, %s710_s18   ;;  %p672_p0 = scmp.ge.s32.totalorder %s710_s18, 1  ;;  %s710_s18 = sphi %s751_s18, %s16_s18  }
   0x2   : > { %p192_p1 = scmp.lt.s32.totalorder %s710_s18, 3 }
   0x4   : > { %p193_p2 = pnand %p672_p0, %p192_p1 }
   0x5   : > { %p228_p3 = scmp.lt.s32.totalorder (!%p193_p2), %s668_s19, 1  ;;  %s713_s28 = smov (!%p193_p2), 111  }
   0x6   : > { %196 = sbr.rel (%p193_p2) target bundleno = 509 (0x1fd), region = 32  ;;  %s714_s29 = smov (!%p193_p2), 112  }
   0x7   : > { %s715_s30 = smov (!%p193_p2), 127   ;;  %s716_s6 = smov (!%p193_p2), 113  }
   0x8   : > { %s717_s7 = smov (!%p193_p2), 1   ;;  %s718_s8 = smov (!%p193_p2), 16  }
   0x9   : > { %s719_s9 = smov (!%p193_p2), 15   ;;  %s720_s10 = smov (!%p193_p2), 17  }
   0xb   : > { %v260_v0 = vlaneseq  ;;  %s863_s19 = smov (!%p228_p3, %s668_s19), 1  ;;  %v712_v2 = vmov 0.0   ;;  %v247_v3 = vld [vmem:[%s858_s2] sm:$0xff]  ;;  %v248_v4 = vld [vmem:[%s858_s2 + $0x8] sm:$0xff]  ;;  %v679_v37 = vld [vmem:[%s858_s2 + $0x10] ss:$0 sm:$0xff] }
   0xc   : > { %252 = vst [vmem:[#allocation2 + $0x40] sm:$0xf0] %v712_v2  ;;  %251 = vst [vmem:[#allocation2 + $0x20] sm:$0xf0] %v712_v2  ;;  %531 = vmatprep.mubr.f32.mxu0 %v712_v2  ;;  %s769_s24 = sshll.u32 %s863_s19, 3  ;;  %vm463_vm8 = vcmask 326656  }
   0xd   : > { %v266_v1 = vshrl.u32 %v260_v0, 7  ;;  %s232_s27 = scalar_lea.vmem %s856_s0, %s769_s24  ;;  %v804_v34 = vand.u32 127, %v260_v0  ;;  %v680_v38 = vld [vmem:[%s858_s2 + $0x18] ss:$0 sm:$0xff]  ;;  %s685_s17 = sshll.u32 %s863_s19, 4  ;;  %vm543_vm9 = vcmask 7168  }
   0xe   : > { %v246_v9 = vld [vmem:[%s232_s27] sm:$0xff]  ;;  %s237_s22 = scalar_lea.vmem %s859_s3, %s685_s17  ;;  %s241_s26 = scalar_lea.vmem %s860_s4, %s769_s24 }
   0xf   : > { %v348_v5 = vsub.s32 4, %v266_v1  ;;  %v373_v6 = vsub.s32 5, %v266_v1  ;;  %v417_v7 = vsub.s32 7, %v266_v1  ;;  %v398_v8 = vsub.s32 6, %v266_v1  ;;  %433 = vrot.lane.b32.xlu1 %v246_v9, %s713_s28  ;;  %408 = vrot.lane.b32.xlu0 %v246_v9, %s714_s29 }
  0x10   : > { %v254_v14 = vcombine.high %v246_v9, %v246_v9  ;;  %v330_v17 = vsub.s32 3, %v266_v1  ;;  %v286_v24 = vsub.s32 1, %v266_v1  ;;  %v311_v28 = vsub.s32 2, %v266_v1 }
  0x11   : > { %v349_v10 = vrot.slane %v247_v3, %v348_v5  ;;  %v353_v11 = vrot.slane %v248_v4, %v348_v5  ;;  %v775_v12 = vrot.slane %v247_v3, %v373_v6  ;;  %v777_v13 = vrot.slane %v248_v4, %v373_v6 }
  0x12   : > { %v779_v15 = vrot.slane %v247_v3, %v417_v7  ;;  %v781_v16 = vrot.slane %v248_v4, %v417_v7  ;;  %v783_v18 = vrot.slane %v247_v3, %v398_v8  ;;  %v785_v19 = vrot.slane %v248_v4, %v398_v8 }
  0x13   : > { %v356_v20 = vcombine.low %v349_v10, %v353_v11  ;;  %v787_v21 = vrot.slane %v247_v3, %v330_v17  ;;  %v789_v22 = vrot.slane %v248_v4, %v330_v17  ;;  %364 = vrot.lane.b32.xlu0 %v246_v9, %s715_s30  ;;  %435 = vrot.lane.b32.xlu1 %v254_v14, %s713_s28  ;;  %v267_v31 = vsub.s32 0, %v266_v1  ;;  %s245_s28 = scalar_lea.vmem %s861_s5, %s769_s24 }
  0x14   : > { %v791_v26 = vrot.slane %v247_v3, %v286_v24  ;;  %v793_v27 = vrot.slane %v248_v4, %v286_v24  ;;  %v795_v29 = vrot.slane %v247_v3, %v311_v28  ;;  %v797_v30 = vrot.slane %v248_v4, %v311_v28 }
  0x15   : > { %v358_v23 = vmul.f32 %v356_v20, %v246_v9  ;;  %v799_v32 = vrot.slane %v247_v3, %v267_v31  ;;  %v801_v33 = vrot.slane %v248_v4, %v267_v31  ;;  %vm437_vm0 = vcmp.lt.s32.totalorder %v804_v34, 111 }
  0x16   : > { %vm368_vm1 = vcmp.lt.s32.totalorder %v804_v34, 127  ;;  %vm412_vm2 = vcmp.lt.s32.totalorder %v804_v34, 112  ;;  %vm393_vm3 = vcmp.lt.s32.totalorder %v804_v34, 113  ;;  %vm325_vm4 = vcmp.lt.s32.totalorder %v804_v34, 1 }
  0x17   : > { %v360_v25 = vcombine.high %v358_v23, %v358_v23  ;;  %362 = vst [vmem:[#allocation2 + $0x48] sm:$0xf] %v358_v23  ;;  %366 = vrot.lane.b32.xlu1 %v254_v14, %s715_s30  ;;  %410 = vrot.lane.b32.xlu0 %v254_v14, %s714_s29  ;;  %vm281_vm5 = vcmp.lt.s32.totalorder %v804_v34, 16  ;;  %vm306_vm6 = vcmp.lt.s32.totalorder %v804_v34, 15  ;;  %vm262_vm7 = vcmp.lt.s32.totalorder %v804_v34, 17 }
  0x19   : > { %363 = vst [vmem:[#allocation2 + $0x10] sm:$0xf] %v360_v25 }
  0x1b   : > { %391 = vrot.lane.b32.xlu1 %v254_v14, %s716_s6  ;;  %389 = vrot.lane.b32.xlu0 %v246_v9, %s716_s6 }
  0x1f   : > { %323 = vrot.lane.b32.xlu1 %v254_v14, %s717_s7  ;;  %321 = vrot.lane.b32.xlu0 %v246_v9, %s717_s7 }
  0x23   : > { %279 = vrot.lane.b32.xlu1 %v254_v14, %s718_s8  ;;  %277 = vrot.lane.b32.xlu0 %v246_v9, %s718_s8 }
  0x27   : > { %304 = vrot.lane.b32.xlu1 %v254_v14, %s719_s9  ;;  %302 = vrot.lane.b32.xlu0 %v246_v9, %s719_s9 }
  0x2b   : > { %258 = vrot.lane.b32.xlu1 %v254_v14, %s720_s10  ;;  %256 = vrot.lane.b32.xlu0 %v246_v9, %s720_s10 }
  0x81   : > { %v434_v35 = vpop.permute.xlu1 %433  ;;  %v409_v36 = vpop.permute.xlu0 %408 }
  0x85   : > { %v365_v39 = vpop.permute.xlu0 %364  ;;  %v436_v40 = vpop.permute.xlu1 %435 }
  0x86   : > { %v438_v41 = vsel %vm437_vm0, %v434_v35, %v436_v40  ;;  %v439_v42 = vsel %vm437_vm0, %v436_v40, %v434_v35 }
  0x87   : > { %v448_v43 = vmul.f32 %v679_v37, %v438_v41  ;;  %v449_v44 = vmul.f32 %v680_v38, %v439_v42  ;;  %v452_v41 = vld [vmem:[%s857_s1] sm:$0xff] }
  0x89   : > { %450 = vst [vmem:[#allocation2 + $0x20] sm:$0xf] %v448_v43  ;;  %451 = vst [vmem:[#allocation2 + $0x40] sm:$0xf] %v449_v44  ;;  %v367_v45 = vpop.permute.xlu1 %366  ;;  %v411_v46 = vpop.permute.xlu0 %410 }
  0x8a   : > { %v369_v47 = vsel %vm368_vm1, %v365_v39, %v367_v45  ;;  %v370_v48 = vsel %vm368_vm1, %v367_v45, %v365_v39  ;;  %v413_v49 = vsel %vm412_vm2, %v409_v36, %v411_v46  ;;  %v414_v50 = vsel %vm412_vm2, %v411_v46, %v409_v36 }
  0x8b   : > { %v379_v51 = vmul.f32 %v775_v12, %v369_v47  ;;  %v380_v52 = vmul.f32 %v777_v13, %v370_v48  ;;  %v423_v53 = vmul.f32 %v779_v15, %v413_v49  ;;  %v424_v54 = vmul.f32 %v781_v16, %v414_v50 }
  0x8d   : > { %v383_v55 = vrot.slane %v379_v51, 4  ;;  %v384_v56 = vrot.slane %v380_v52, 4  ;;  %v427_v57 = vrot.slane %v423_v53, 4  ;;  %v428_v58 = vrot.slane %v424_v54, 4  ;;  %v392_v59 = vpop.permute.xlu1 %391  ;;  %v390_v60 = vpop.permute.xlu0 %389 }
  0x8e   : > { %v394_v61 = vsel %vm393_vm3, %v390_v60, %v392_v59  ;;  %v395_v62 = vsel %vm393_vm3, %v392_v59, %v390_v60 }
  0x8f   : > { %387 = vst [vmem:[#allocation2 + $0x48] sm:$0xf0] %v383_v55  ;;  %388 = vst [vmem:[#allocation2 + $0x10] sm:$0xf0] %v384_v56  ;;  %v404_v63 = vmul.f32 %v783_v18, %v394_v61  ;;  %v405_v0 = vmul.f32 %v785_v19, %v395_v62 }
  0x90   : > { %431 = vst [vmem:[#allocation2 + $0x30] sm:$0xf0] %v427_v57  ;;  %432 = vst [vmem:[#allocation2 + $0x28] sm:$0xf0] %v428_v58  ;;  %v462_v1 = vld [vmem:[#allocation2 + $0x40] sm:$0xff] }
  0x91   : > { %v461_v2 = vld [vmem:[#allocation2 + $0x20] sm:$0xff]  ;;  %406 = vst [vmem:[#allocation2 + $0x30] sm:$0xf] %v404_v63  ;;  %407 = vst [vmem:[#allocation2 + $0x28] sm:$0xf] %v405_v0  ;;  %489 = vmatprep.subr.mxu0 %v462_v1  ;;  %v324_v3 = vpop.permute.xlu1 %323  ;;  %v322_v4 = vpop.permute.xlu0 %321 }
  0x92   : > { %v326_v5 = vsel %vm325_vm4, %v322_v4, %v324_v3  ;;  %v327_v6 = vsel %vm325_vm4, %v324_v3, %v322_v4  ;;  %490 = vmatpush1.msra.mxu0 %v461_v2 }
  0x93   : > { %v336_v7 = vmul.f32 %v787_v21, %v327_v6  ;;  %v337_v8 = vmul.f32 %v789_v22, %v326_v5 }
  0x95   : > { %v340_v9 = vrot.slane %v336_v7, 4  ;;  %v341_v10 = vrot.slane %v337_v8, 4  ;;  %v280_v11 = vpop.permute.xlu1 %279  ;;  %v278_v12 = vpop.permute.xlu0 %277 }
  0x96   : > { %v282_v13 = vsel %vm281_vm5, %v278_v12, %v280_v11  ;;  %v283_v14 = vsel %vm281_vm5, %v280_v11, %v278_v12  ;;  %v458_v25 = vld [vmem:[#allocation2 + $0x10] sm:$0xff] }
  0x97   : > { %344 = vst [vmem:[#allocation2 + $0x38] sm:$0xf0] %v340_v9  ;;  %345 = vst [vmem:[#allocation2 + $0x18] sm:$0xf0] %v341_v10  ;;  %v292_v15 = vmul.f32 %v791_v26, %v283_v14  ;;  %v293_v16 = vmul.f32 %v793_v27, %v282_v13  ;;  %v457_v27 = vld [vmem:[#allocation2 + $0x48] sm:$0xff] }
  0x98   : > { %v460_v17 = vld [vmem:[#allocation2 + $0x28] sm:$0xff]  ;;  %v459_v18 = vld [vmem:[#allocation2 + $0x30] sm:$0xff] }
  0x99   : > { %v296_v19 = vrot.slane %v292_v15, 4  ;;  %v297_v20 = vrot.slane %v293_v16, 4  ;;  %v305_v21 = vpop.permute.xlu1 %304  ;;  %491 = vmatprep.subr.mxu0 %v460_v17  ;;  %v303_v22 = vpop.permute.xlu0 %302 }
  0x9a   : > { %v307_v23 = vsel %vm306_vm6, %v303_v22, %v305_v21  ;;  %v308_v24 = vsel %vm306_vm6, %v305_v21, %v303_v22  ;;  %492 = vmatpush1.msra.mxu0 %v459_v18 }
  0x9b   : > { %300 = vst [vmem:[#allocation2 + $0x8] sm:$0xf0] %v296_v19  ;;  %301 = vst [vmem:[#allocation2] sm:$0xf0] %v297_v20  ;;  %v317_v28 = vmul.f32 %v795_v29, %v308_v24  ;;  %v318_v26 = vmul.f32 %v797_v30, %v307_v23  ;;  %493 = vmatprep.subr.mxu0 %v458_v25 }
  0x9c   : > { %494 = vmatpush1.msra.mxu0 %v457_v27 }
  0x9d   : > { %319 = vst [vmem:[#allocation2 + $0x38] sm:$0xf] %v317_v28  ;;  %320 = vst [vmem:[#allocation2 + $0x18] sm:$0xf] %v318_v26  ;;  %v259_v31 = vpop.permute.xlu1 %258  ;;  %v257_v35 = vpop.permute.xlu0 %256 }
  0x9e   : > { %v263_v36 = vsel %vm262_vm7, %v257_v35, %v259_v31  ;;  %v264_v37 = vsel %vm262_vm7, %v259_v31, %v257_v35 }
  0x9f   : > { %v273_v38 = vmul.f32 %v799_v32, %v264_v37  ;;  %v274_v39 = vmul.f32 %v801_v33, %v263_v36 }
  0xa1   : > { %275 = vst [vmem:[#allocation2 + $0x8] sm:$0xf] %v273_v38  ;;  %276 = vst [vmem:[#allocation2] sm:$0xf] %v274_v39 }
  0xa4   : > { %v456_v29 = vld [vmem:[#allocation2 + $0x18] sm:$0xff] }
  0xa5   : > { %v455_v30 = vld [vmem:[#allocation2 + $0x38] sm:$0xff]  ;;  %495 = vmatprep.subr.mxu0 %v456_v29 }
  0xa6   : > { %496 = vmatpush1.msra.mxu0 %v455_v30 }
  0xa8   : > { %v454_v40 = vld [vmem:[#allocation2] sm:$0xff]  ;;  %v453_v34 = vld [vmem:[#allocation2 + $0x8] sm:$0xff] }
  0xa9   : > { %497 = vmatprep.subr.mxu0 %v454_v40 }
  0xaa   : > { %498 = vmatpush1.msra.mxu0 %v453_v34 }
  0xab   : > { %681 = vmatmul.mubr.msk.f32.vlgmr.msra.gmra.mxu0 %vm463_vm8, %v452_v41 }
 0x16b   : > { %v533_v32 = vpop.f32.mrf.mxu0 }
 0x16c   : > { %538 = vst [vmem:[%s237_s22] sm:$0xff] %v533_v32  ;;  %v545_v44 = vmul.f32 %v533_v32, %v533_v32 }
 0x16d   : > { %v535_v33 = vpop.f32.mrf.mxu0 }
 0x16e   : > { %539 = vst [vmem:[%s237_s22 + $0x8] sm:$0xff] %v535_v33  ;;  %v546_v42 = vmul.f32 %v535_v33, %v535_v33  ;;  %v540_v43 = vadd.f32 %v535_v33, %v533_v32 }
 0x170   : > { %541 = vadd.xlane.f32.xlu0 %v540_v43  ;;  %v547_v45 = vadd.f32 %v546_v42, %v545_v44 }
 0x172   : > { %548 = vadd.xlane.f32.xlu1 %v547_v45 }
 0x1f9   : > { %v542_v46 = vpop.xlane.xlu0 %541 }
 0x1fa   : > { %544 = vst.msk [vmem:[%s241_s26] sm:$0xff] %vm543_vm9, %v542_v46 }
 0x1fb   : > { %v549_v47 = vpop.xlane.xlu1 %548 }
 0x1fc   : > { %550 = vst.msk [vmem:[%s245_s28] sm:$0xff] %vm543_vm9, %v549_v47 }
 0x1fd PF: > { %s16_s18 = sadd.s32 1, %s710_s18  }
 0x1fe   : > { %p13_p4 = scmp.ge.s32.totalorder %s16_s18, 4  }
 0x200   :  { %15 = sbr.rel (!%p13_p4) target bundleno = 1 (0x1), region = 86 }

</bundles_post_ra>
